<compile_context>
chip_gen: v7x
topology: tpu7x:2x2x1
jax: 0.10.0
libtpu: 0.0.40
codegen_flags: <defaults>
</compile_context>

<pallas_src>
import jax
import jax.numpy as jnp
from jax.experimental import pallas as pl
from jax.experimental.pallas import tpu as pltpu

COLS = 1024          # lane-dense last dim (multiple of 128)
MAX_ROW_TILE = 512   # 512 * 1024 * 4 B = 2 MiB per f32 block
NUM_SPLITS = 2       # leading "parallel" grid axis (2 TCs on v7x)


def _cdiv(a, b):
    return (a + b - 1) // b


def _round_up(a, b):
    return _cdiv(a, b) * b


def _l1_partial_kernel(x_ref, y_ref, part_ref):
    """Accumulate per-lane partial sums of |x - y| into an (8, COLS) block.

    Grid = (NUM_SPLITS, inner_steps). The output block depends only on the
    leading (parallel) axis, so it stays VMEM-resident across the inner
    (arbitrary) reduction axis — classic accumulator pattern.
    """
    @pl.when(pl.program_id(1) == 0)
    def _():
        part_ref[...] = jnp.zeros_like(part_ref)

    d = jnp.abs(x_ref[...] - y_ref[...])          # (row_tile, COLS) f32
    rt, cols = d.shape
    # Fold the row_tile rows into groups of 8 sublanes: layout-trivial reshape
    # (splits the major dim only) followed by pure VPU adds.
    part_ref[...] += d.reshape(rt // 8, 8, cols).sum(axis=0)


def _scale_kernel(scale_ref, pred_ref, out_ref):
    """out = scalar_L1_mean * pred (broadcast a scalar over a large tile)."""
    out_ref[...] = scale_ref[0] * pred_ref[...]


def reg_loss_forward(x, y, pred):
    """Pallas implementation of Reg_loss.forward: L1Loss(x, y) * pred.

    Note: the reference module also builds an internal `relativeloss`/`loss`
    value that is never returned (dead code), so it is not computed.
    """
    assert x.shape == y.shape == pred.shape
    total = x.size

    # ---- layout / tiling decisions -------------------------------------
    rows_needed = _cdiv(total, COLS)
    row_tile = min(MAX_ROW_TILE,
                   max(8, _round_up(_cdiv(rows_needed, NUM_SPLITS), 8)))
    padded_rows = _round_up(rows_needed, NUM_SPLITS * row_tile)
    inner_steps = padded_rows // (NUM_SPLITS * row_tile)
    padded_total = padded_rows * COLS

    def _flat_pad(a):
        a = a.reshape(-1).astype(jnp.float32)
        return jnp.pad(a, (0, padded_total - total)).reshape(padded_rows, COLS)

    x2 = _flat_pad(x)
    y2 = _flat_pad(y)      # padded identically to x -> |x - y| == 0 in the pad
    p2 = _flat_pad(pred)

    # ---- Pass 1: per-lane partial sums of |x - y| ----------------------
    partials = pl.pallas_call(
        _l1_partial_kernel,
        out_shape=jax.ShapeDtypeStruct((NUM_SPLITS * 8, COLS), jnp.float32),
        grid=(NUM_SPLITS, inner_steps),
        in_specs=[
            pl.BlockSpec((row_tile, COLS),
                         lambda c, i: (c * inner_steps + i, 0)),
            pl.BlockSpec((row_tile, COLS),
                         lambda c, i: (c * inner_steps + i, 0)),
        ],
        out_specs=pl.BlockSpec((8, COLS), lambda c, i: (c, 0)),
        compiler_params=pltpu.CompilerParams(
            dimension_semantics=("parallel", "arbitrary")),
    )(x2, y2)

    # Final cross-lane reduce + mean (divide by the ORIGINAL element count).
    l1_mean = (jnp.sum(partials) / jnp.float32(total)).reshape(1)

    # ---- Pass 2: elementwise scale of pred by the scalar mean -----------
    out2 = pl.pallas_call(
        _scale_kernel,
        out_shape=jax.ShapeDtypeStruct((padded_rows, COLS), jnp.float32),
        grid=(padded_rows // row_tile,),
        in_specs=[
            pl.BlockSpec(memory_space=pltpu.MemorySpace.SMEM),  # scalar L1 mean
            pl.BlockSpec((row_tile, COLS), lambda i: (i, 0)),
        ],
        out_specs=pl.BlockSpec((row_tile, COLS), lambda i: (i, 0)),
        compiler_params=pltpu.CompilerParams(
            dimension_semantics=("parallel",)),
    )(l1_mean, p2)

    return out2.reshape(-1)[:total].reshape(x.shape)


if __name__ == "__main__":
    key = jax.random.PRNGKey(0)
    kx, ky, kp = jax.random.split(key, 3)
    shape = (2, 4, 16, 16)  # NCHW: batch=2, channels=4, spatial=16x16
    x = jax.random.normal(kx, shape, dtype=jnp.float32)
    y = jax.random.normal(ky, shape, dtype=jnp.float32)
    pred = jax.random.normal(kp, shape, dtype=jnp.float32)

    out = reg_loss_forward(x, y, pred)
    out = jax.block_until_ready(out)

    # Plain-JAX reference: L1Loss(x, y) * pred
    ref = jnp.mean(jnp.abs(x - y)) * pred
    assert out.shape == shape
    assert jnp.allclose(out, ref, atol=1e-5, rtol=1e-5), "mismatch vs reference"

    print("KERNEL_OK")
</pallas_src>

<mosaic_0001>
module attributes {stable_mosaic.version = 11 : i64} {
  func.func @_l1_partial_kernel(%arg0: i32, %arg1: i32, %arg2: memref<8x1024xf32, #tpu.memory_space<vmem>>, %arg3: memref<8x1024xf32, #tpu.memory_space<vmem>>, %arg4: memref<8x1024xf32, #tpu.memory_space<vmem>>) attributes {dimension_semantics = [#tpu.dimension_semantics<parallel>, #tpu.dimension_semantics<arbitrary>], iteration_bounds = array<i64: 2, 1>, scalar_prefetch = 0 : i64, scratch_operands = 0 : i64, tpu.core_type = #tpu.core_type<tc>, window_params = [{transform_indices = @transform_0, window_bounds = array<i64: 8, 1024>}, {transform_indices = @transform_1, window_bounds = array<i64: 8, 1024>}, {transform_indices = @transform_2, window_bounds = array<i64: 8, 1024>}]} {
    %c0_i32 = arith.constant 0 : i32
    %0 = arith.cmpi eq, %arg1, %c0_i32 : i32
    %1 = arith.extui %0 : i1 to i32
    %c0_i32_0 = arith.constant 0 : i32
    %2 = arith.cmpi ne, %1, %c0_i32_0 : i32
    scf.if %2 {
      %cst_8 = arith.constant 0.000000e+00 : f32
      %12 = vector.broadcast %cst_8 : f32 to vector<8x1024xf32>
      %c0_9 = arith.constant 0 : index
      %c0_10 = arith.constant 0 : index
      %13 = vector.load %arg4[%c0_9, %c0_10] : memref<8x1024xf32, #tpu.memory_space<vmem>>, vector<8x1024xf32>
      tpu.vector_store %arg4[%c0_9, %c0_10], %12 {strides = array<i32>} : memref<8x1024xf32, #tpu.memory_space<vmem>>, vector<8x1024xf32>,
    } else {
    }
    %c0 = arith.constant 0 : index
    %c0_1 = arith.constant 0 : index
    %3 = vector.load %arg2[%c0, %c0_1] : memref<8x1024xf32, #tpu.memory_space<vmem>>, vector<8x1024xf32>
    %c0_2 = arith.constant 0 : index
    %c0_3 = arith.constant 0 : index
    %4 = vector.load %arg3[%c0_2, %c0_3] : memref<8x1024xf32, #tpu.memory_space<vmem>>, vector<8x1024xf32>
    %5 = arith.subf %3, %4 : vector<8x1024xf32>
    %6 = math.absf %5 : vector<8x1024xf32>
    %c0_4 = arith.constant 0 : index
    %c0_5 = arith.constant 0 : index
    %7 = vector.load %arg4[%c0_4, %c0_5] : memref<8x1024xf32, #tpu.memory_space<vmem>>, vector<8x1024xf32>
    %8 = vector.shape_cast %6 : vector<8x1024xf32> to vector<1x8x1024xf32>
    %cst = arith.constant dense<0.000000e+00> : vector<8x1024xf32>
    %9 = vector.multi_reduction <add>, %8, %cst [0] : vector<1x8x1024xf32> to vector<8x1024xf32>
    %10 = arith.addf %7, %9 : vector<8x1024xf32>
    %c0_6 = arith.constant 0 : index
    %c0_7 = arith.constant 0 : index
    %11 = vector.load %arg4[%c0_6, %c0_7] : memref<8x1024xf32, #tpu.memory_space<vmem>>, vector<8x1024xf32>
    tpu.vector_store %arg4[%c0_6, %c0_7], %10 {strides = array<i32>} : memref<8x1024xf32, #tpu.memory_space<vmem>>, vector<8x1024xf32>,
    return
  }
  func.func @transform_0(%arg0: i32, %arg1: i32) -> (i32, i32) {
    %c1_i32 = arith.constant 1 : i32
    %0 = arith.muli %arg0, %c1_i32 : i32
    %1 = arith.addi %0, %arg1 : i32
    %c0_i32 = arith.constant 0 : i32
    %c0_i32_0 = arith.constant 0 : i32
    return %1, %c0_i32 : i32, i32
  }
  func.func @transform_1(%arg0: i32, %arg1: i32) -> (i32, i32) {
    %c1_i32 = arith.constant 1 : i32
    %0 = arith.muli %arg0, %c1_i32 : i32
    %1 = arith.addi %0, %arg1 : i32
    %c0_i32 = arith.constant 0 : i32
    %c0_i32_0 = arith.constant 0 : i32
    return %1, %c0_i32 : i32, i32
  }
  func.func @transform_2(%arg0: i32, %arg1: i32) -> (i32, i32) {
    %c0_i32 = arith.constant 0 : i32
    %c0_i32_0 = arith.constant 0 : i32
    return %arg0, %c0_i32 : i32, i32
  }
}

</mosaic_0001>

<bundles_post_ra>
// kernel: tpu_custom_call.1
= control target key start
LH: loop header
LB: loop body
LE: loop exit
PB: predicated region body
PF: predicated region fallthrough
CT: control target
= control target key end

     0   :  { %7 = vsyncpa [#allocation3], 0  ;;  %s903_s0 = inlined_call_operand.hbm [shape: f32[16,1024], index: 0, kind: input, shape index: {}]   ;;  %s904_s1 = inlined_call_operand.hbm [shape: f32[16,1024], index: 1, kind: input, shape index: {}]   ;;  %s905_s2 = inlined_call_operand.hbm [shape: f32[16,1024], index: 2, kind: output, shape index: {}]  }
   0x1   :  { %9 = vsyncpa [#allocation3 + $0x1], 0 }
   0x2   :  { %10 = vsyncpa [#allocation6], 0 }
   0x3   :  { %12 = vsyncpa [#allocation6 + $0x1], 0 }
   0x4   :  { %13 = vsyncpa [#allocation4], 0 }
   0x5   :  { %15 = vsyncpa [#allocation4 + $0x1], 0  ;;  %s668_s9 = smov 0   ;;  %s670_s10 = smov 0  }
   0x6   :  { %s672_s11 = smov 0   ;;  %s674_s12 = smov 0  }
   0x7   :  { %s676_s13 = smov 0   ;;  %s678_s14 = smov 0  }
   0x8 LB: > { %s412_s15 = sadd.s32 4294967295, %s648_s14   ;;  %s413_s16 = sadd.s32 4294967294, %s648_s14   ;;  %s648_s14 = sphi %s678_s14, %s21_s14   ;;  %s644_s13 = sphi %s676_s13, %s925_s13   ;;  %s640_s12 = sphi %s674_s12, %s924_s12   ;;  %s636_s11 = sphi %s672_s11, %s923_s11   ;;  %s632_s10 = sphi %s670_s10, %s922_s10   ;;  %s628_s9 = sphi %s668_s9, %s921_s9  }
   0x9   : > { %s33_s17 = sadd.s32 1, %s644_s13  ;;  %s42_s18 = sadd.s32 1, %s636_s11 }
   0xa   : > { %p35_p0 = scmp.ge.s32.totalorder %s33_s17, 2  ;;  %p49_p1 = scmp.ne.s32.totalorder %s636_s11, %s632_s10 }
   0xb   : > { %p50_p2 = scmp.eq.s32.totalorder %s648_s14, 0  ;;  %p55_p3 = scmp.ne.s32.totalorder %s632_s10, %s628_s9 }
   0xc   : > { %s927_s17 = smov (%p35_p0, %s33_s17), 0  ;;  %p56_p5 = scmp.eq.s32.totalorder %s412_s15, 0 }
   0xd   : > { %p709_p4 = por %p50_p2, %p49_p1  ;;  %s39_s20 = ssub.s32 %s644_s13, %s927_s17 }
   0xe   : > { %p107_p6 = scmp.eq.s32.totalorder %s412_s15, 1  ;;  %p40_p7 = scmp.eq.s32.totalorder %s39_s20, 0 }
   0xf   : > { %p715_p8 = por %p56_p5, %p55_p3  ;;  %p113_p10 = scmp.eq.s32.totalorder %s413_s16, 1 }
  0x10   : > { %p719_p9 = por %p107_p6, %p49_p1  ;;  %p451_p13 = scmp.lt.s32.totalorder %s648_s14, 2 }
  0x11   : > { %s909_s21 = scalar_select %p715_p8, 1, 0 }
  0x12   : > { %s910_s22 = scalar_select %p719_p9, 1, 0 }
  0x13   : > { %s724_s23 = scalar_select %p40_p7, %s636_s11, %s42_s18  }
  0x14   : > { %p726_p11 = por %p113_p10, %p55_p3  ;;  %s733_s25 = sand.u32 1, %s636_s11  }
  0x15   : > { %s416_s26 = sshll.u32 %s733_s25, 6  ;;  %s431_s27 = sshll.u32 %s644_s13, 10 }
  0x16   : > { %s911_s24 = scalar_select %p726_p11, 1, 0 }
  0x17   : > { %s742_s30 = scalar_lea.hbm %s903_s0, %s431_s27  ;;  %s137_s3 = scalar_lea.vmem [#allocation2], %s416_s26 }
  0x18   : > { %s146_s4 = sshll.u32 %s137_s3, 4  ;;  %p750_p0 = pnand %p451_p13, %p709_p4  ;;  %s746_s4 = int_to_ptr.vmem [resolvable:$true] %s146_s4 }
  0x19   : > { %s134_s6 = scalar_lea.sflag [#allocation3], %s733_s25  ;;  %s502_s7 = scalar_lea.hbm %s742_s30, 1024 }
  0x1a   : > { %p503_p3 = scmp.ne.s32.totalorder %s742_s30, %s502_s7  ;;  %p504_p5 = pneg %p750_p0 }
  0x1b   : > { %s507_s16 = scalar_lea.hbm %s903_s0, 2048  ;;  %p508_p4 = scmp.lt.u32.totalorder %s742_s30, %s903_s0 }
  0x1c   : > { %p505_p6 = pnand %p504_p5, %p503_p3  ;;  %p509_p10 = scmp.lt.u32.totalorder %s507_s16, %s502_s7 }
  0x1d   : > { %p511_p12 = scmp.lt.u32.totalorder %s502_s7, %s742_s30 }
  0x1e   : > { %p506_p7 = pneg %p505_p6  ;;  %p510_p13 = por %p509_p10, %p508_p4 }
  0x20   : > { %p512_p1 = por %p511_p12, %p510_p13 }
  0x22   : > { %p513_p2 = pnand %p512_p1, %p506_p7 }
  0x24   : > { %516 = shalt.err (!%p513_p2)
}
  0x25   : > { %s517_s20 = scalar_lea.vmem %s746_s4, 1024  ;;  %s650_s28 = smov [#allocation2]  }
  0x26   : > { %p518_p3 = scmp.ne.s32.totalorder %s746_s4, %s517_s20  ;;  %s522_s29 = sshll.u32 %s650_s28, 4  ;;  %s523_s29 = int_to_ptr.vmem [resolvable:$false] %s522_s29 }
  0x27   : > { %s524_s3 = scalar_lea.vmem %s523_s29, 2048  ;;  %p525_p9 = scmp.lt.s32.totalorder %s746_s4, %s523_s29 }
  0x28   : > { %p520_p6 = pnand %p518_p3, %p504_p5  ;;  %p526_p4 = scmp.lt.s32.totalorder %s524_s3, %s517_s20 }
  0x2a   : > { %p521_p11 = pneg %p520_p6  ;;  %p527_p10 = por %p526_p4, %p525_p9 }
  0x2c   : > { %p528_p12 = pnand %p527_p10, %p521_p11 }
  0x2e   : > { %531 = shalt.err (!%p528_p12)
}
  0x2f   : > { %443 = dma.hbm_to_vmem [thread:$0]  (!%p750_p0), %s742_s30, 1024, %s746_s4, %s134_s6  }
  0x30   : > { %p913_p1 = scmp.lt.s32.totalorder %s648_s14, 3  ;;  %p914_p2 = scmp.ge.s32.totalorder %s648_s14, 1 }
  0x31   : > { %s795_s16 = scalar_lea.hbm %s904_s1, %s431_s27  ;;  %s157_s18 = scalar_lea.vmem [#allocation5], %s416_s26 }
  0x32   : > { %p786_p7 = pnand %p914_p2, %p913_p1  ;;  %s166_s19 = sshll.u32 %s157_s18, 4  ;;  %s167_s19 = int_to_ptr.vmem [resolvable:$true] %s166_s19 }
  0x33   : > { %s154_s30 = scalar_lea.sflag [#allocation6], %s733_s25  ;;  %s532_s4 = scalar_lea.hbm %s795_s16, 1024 }
  0x34   : > { %s915_s7 = scalar_select %p786_p7, 1, 0 }
  0x35   : > { %p533_p9 = scmp.ne.s32.totalorder %s795_s16, %s532_s4  ;;  %s537_s27 = scalar_lea.hbm %s904_s1, 2048 }
  0x36   : > { %p538_p3 = scmp.lt.u32.totalorder %s795_s16, %s904_s1  ;;  %p539_p6 = scmp.lt.u32.totalorder %s537_s27, %s532_s4 }
  0x37   : > { %p535_p11 = pnand %p533_p9, %p504_p5  ;;  %p541_p10 = scmp.lt.u32.totalorder %s532_s4, %s795_s16 }
  0x38   : > { %p540_p4 = por %p539_p6, %p538_p3 }
  0x39   : > { %p536_p13 = pneg %p535_p11 }
  0x3a   : > { %p542_p12 = por %p541_p10, %p540_p4 }
  0x3c   : > { %p543_p1 = pnand %p542_p12, %p536_p13 }
  0x3e   : > { %546 = shalt.err (!%p543_p1)
}
  0x3f   : > { %s547_s25 = scalar_lea.vmem %s167_s19, 1024  ;;  %s651_s26 = smov [#allocation5]  }
  0x40   : > { %p548_p2 = scmp.ne.s32.totalorder %s167_s19, %s547_s25  ;;  %s552_s3 = sshll.u32 %s651_s26, 4  ;;  %s553_s3 = int_to_ptr.vmem [resolvable:$false] %s552_s3 }
  0x41   : > { %s554_s8 = scalar_lea.vmem %s553_s3, 2048  ;;  %p555_p8 = scmp.lt.s32.totalorder %s167_s19, %s553_s3 }
  0x42   : > { %p550_p9 = pnand %p548_p2, %p504_p5  ;;  %p556_p7 = scmp.lt.s32.totalorder %s554_s8, %s547_s25 }
  0x44   : > { %p551_p11 = pneg %p550_p9  ;;  %p557_p3 = por %p556_p7, %p555_p8 }
  0x46   : > { %p558_p6 = pnand %p557_p3, %p551_p11 }
  0x48   : > { %561 = shalt.err (!%p558_p6)
}
  0x49   : > { %446 = dma.hbm_to_vmem [thread:$0]  (!%p750_p0), %s795_s16, 1024, %s167_s19, %s154_s30  }
  0x4a   : > { %p916_p13 = scmp.ne.s32.totalorder %s915_s7, 0 }
  0x4b   : > { %s822_s15 = sand.u32 (!%p916_p13), 1, %s632_s10   ;;  %p917_p8 = scmp.ne.s32.totalorder (!%p916_p13), %s909_s21, 0 }
  0x4c   : > { %175 = sbr.rel (%p916_p13) target bundleno = 114 (0x72), region = 28  ;;  %s825_s18 = sshll.u32 (!%p916_p13), %s822_s15, 6 }
  0x4d   : > { %s178_s4 = scalar_lea.sflag (!%p916_p13), [#allocation3], %s822_s15  ;;  %s829_s6 = scalar_lea.vmem (!%p916_p13), [#allocation2], %s825_s18 }
  0x53   : > { %615 = dma.done.wait (%p917_p8), %s178_s4, 1024  }
  0x54   : > { %617 = vsyncadd (%p917_p8), %s178_s4, 4294966272  ;;  %s187_s5 = scalar_lea.sflag [#allocation6], %s822_s15  ;;  %s190_s7 = scalar_lea.vmem [#allocation5], %s825_s18 }
  0x55   : > { %619 = dma.done.wait (%p917_p8), %s187_s5, 1024  }
  0x56   : > { %621 = vsyncadd (%p917_p8), %s187_s5, 4294966272  ;;  %v230_v0 = vld [vmem:[%s829_s6] sm:$0xff]  ;;  %v231_v2 = vld [vmem:[%s829_s6 + $0x8] sm:$0xff]  ;;  %s215_s21 = scalar_lea.vmem [#allocation7], %s825_s18  ;;  %s433_s16 = sshll.u32 %s640_s12, 10 }
  0x57   : > { %v238_v1 = vld [vmem:[%s190_s7] sm:$0xff]  ;;  %v239_v4 = vld [vmem:[%s190_s7 + $0x8] sm:$0xff]  ;;  %v232_v5 = vld [vmem:[%s829_s6 + $0x10] sm:$0xff]  ;;  %s309_s19 = sshll.u32 %s215_s21, 4  ;;  %s854_s27 = scalar_lea.hbm %s905_s2, %s433_s16  ;;  %s856_s19 = int_to_ptr.vmem [resolvable:$true] %s309_s19 }
  0x58   : > { %v246_v3 = vsub.f32 %v230_v0, %v238_v1  ;;  %v240_v6 = vld [vmem:[%s190_s7 + $0x10] sm:$0xff]  ;;  %v247_v7 = vsub.f32 %v231_v2, %v239_v4  ;;  %v233_v9 = vld [vmem:[%s829_s6 + $0x18] sm:$0xff]  ;;  %v234_v11 = vld [vmem:[%s829_s6 + $0x20] sm:$0xff]  ;;  %s295_s28 = scalar_lea.sflag [#allocation4], %s822_s15  ;;  %s562_s29 = scalar_lea.vmem %s856_s19, 1024 }
  0x59   : > { %v248_v8 = vsub.f32 %v232_v5, %v240_v6  ;;  %v241_v10 = vld [vmem:[%s190_s7 + $0x18] sm:$0xff]  ;;  %v242_v14 = vld [vmem:[%s190_s7 + $0x20] sm:$0xff]  ;;  %v235_v15 = vld [vmem:[%s829_s6 + $0x28] sm:$0xff]  ;;  %p563_p0 = scmp.ne.s32.totalorder %s856_s19, %s562_s29  ;;  %p918_p5 = scmp.ne.s32.totalorder %s910_s22, 0 }
  0x5a   : > { %v254_v12 = vand.u32 2147483647, %v246_v3  ;;  %v249_v13 = vsub.f32 %v233_v9, %v241_v10  ;;  %v243_v16 = vld [vmem:[%s190_s7 + $0x28] sm:$0xff]  ;;  %v255_v17 = vand.u32 2147483647, %v247_v7  ;;  %v250_v19 = vsub.f32 %v234_v11, %v242_v14  ;;  %v236_v21 = vld [vmem:[%s829_s6 + $0x30] sm:$0xff] }
  0x5b   : > { %v256_v18 = vand.u32 2147483647, %v248_v8  ;;  %v251_v20 = vsub.f32 %v235_v15, %v243_v16  ;;  %v244_v22 = vld [vmem:[%s190_s7 + $0x30] sm:$0xff]  ;;  %v237_v25 = vld [vmem:[%s829_s6 + $0x38] sm:$0xff]  ;;  %p564_p7 = pnand %p563_p0, %p918_p5  ;;  %s652_s12 = smov [#allocation7]  }
  0x5c   : > { %v257_v23 = vand.u32 2147483647, %v249_v13  ;;  %v252_v24 = vsub.f32 %v236_v21, %v244_v22  ;;  %v245_v26 = vld [vmem:[%s190_s7 + $0x38] sm:$0xff]  ;;  %v258_v27 = vand.u32 2147483647, %v250_v19  ;;  %286 = vst [vmem:[%s215_s21] sm:$0xff] %v254_v12  ;;  %287 = vst [vmem:[%s215_s21 + $0x8] sm:$0xff] %v255_v17 }
  0x5d   : > { %v259_v28 = vand.u32 2147483647, %v251_v20  ;;  %v253_v30 = vsub.f32 %v237_v25, %v245_v26  ;;  %288 = vst [vmem:[%s215_s21 + $0x10] sm:$0xff] %v256_v18  ;;  %p565_p4 = pneg %p564_p7  ;;  %s566_s25 = sshll.u32 %s652_s12, 4  ;;  %s567_s25 = int_to_ptr.vmem [resolvable:$false] %s566_s25 }
  0x5e   : > { %v260_v29 = vand.u32 2147483647, %v252_v24  ;;  %289 = vst [vmem:[%s215_s21 + $0x18] sm:$0xff] %v257_v23  ;;  %290 = vst [vmem:[%s215_s21 + $0x20] sm:$0xff] %v258_v27  ;;  %s568_s26 = scalar_lea.vmem %s567_s25, 2048  ;;  %p569_p10 = scmp.lt.s32.totalorder %s856_s19, %s567_s25 }
  0x5f   : > { %v261_v31 = vand.u32 2147483647, %v253_v30  ;;  %291 = vst [vmem:[%s215_s21 + $0x28] sm:$0xff] %v259_v28  ;;  %p570_p12 = scmp.lt.s32.totalorder %s568_s26, %s562_s29 }
  0x60   : > { %292 = vst [vmem:[%s215_s21 + $0x30] sm:$0xff] %v260_v29 }
  0x61   : > { %293 = vst [vmem:[%s215_s21 + $0x38] sm:$0xff] %v261_v31  ;;  %p571_p1 = por %p570_p12, %p569_p10 }
  0x63   : > { %p572_p2 = pnand %p571_p1, %p565_p4 }
  0x65   : > { %575 = shalt.err (!%p572_p2)
}
  0x66   : > { %s576_s3 = scalar_lea.hbm %s854_s27, 1024  ;;  %s580_s18 = scalar_lea.hbm %s905_s2, 2048 }
  0x67   : > { %p577_p9 = scmp.ne.s32.totalorder %s854_s27, %s576_s3  ;;  %p581_p6 = scmp.lt.u32.totalorder %s854_s27, %s905_s2 }
  0x68   : > { %p582_p13 = scmp.lt.u32.totalorder %s580_s18, %s576_s3  ;;  %p584_p0 = scmp.lt.u32.totalorder %s576_s3, %s854_s27 }
  0x69   : > { %p578_p11 = pnand %p577_p9, %p918_p5 }
  0x6a   : > { %p583_p8 = por %p582_p13, %p581_p6 }
  0x6b   : > { %p579_p3 = pneg %p578_p11 }
  0x6c   : > { %p585_p7 = por %p584_p0, %p583_p8 }
  0x6e   : > { %p586_p4 = pnand %p585_p7, %p579_p3 }
  0x70   : > { %589 = shalt.err (!%p586_p4)
}
  0x71   : > { %438 = dma.vmem_to_hbm [thread:$0]  (%p918_p5), %s856_s19, 1024, %s854_s27, %s295_s28  }
  0x72 PF: > { %s321_s5 = sand.u32 1, %s628_s9   ;;  %p919_p10 = scmp.ne.s32.totalorder %s911_s24, 0 }
  0x73   : > { %p920_p12 = scmp.ge.s32.totalorder %s648_s14, 2  ;;  %s322_s7 = scalar_lea.sflag [#allocation4], %s321_s5 }
  0x75   : > { %p448_p1 = pnand %p920_p12, %p919_p10 }
  0x77   : > { %623 = dma.done.wait (!%p448_p1), %s322_s7, 1024  }
  0x78   : > { %625 = vsyncadd (!%p448_p1), %s322_s7, 4294966272  ;;  %s21_s14 = sadd.s32 1, %s648_s14   ;;  %s921_s9 = smov %s632_s10 }
  0x79   : > { %p18_p2 = scmp.ge.s32.totalorder %s21_s14, 4   ;;  %s922_s10 = smov %s636_s11 }
  0x7a   : > { %s923_s11 = smov %s724_s23  ;;  %s924_s12 = smov %s644_s13 }
  0x7b   : > { %s925_s13 = smov %s927_s17  ;;  %20 = sbr.rel (!%p18_p2) target bundleno = 8 (0x8), region = 90 }
  0x82   :  { %327 = vsyncpa [#allocation3], 1 }
  0x83   :  { %329 = vsyncpa [#allocation3 + $0x1], 1 }
  0x84   :  { %330 = vsyncpa [#allocation6], 1 }
  0x85   :  { %332 = vsyncpa [#allocation6 + $0x1], 1 }
  0x86   :  { %333 = vsyncpa [#allocation4], 1 }
  0x87   :  { %335 = vsyncpa [#allocation4 + $0x1], 1 }

</bundles_post_ra>
